<compile_context>
chip_gen: v7x
topology: tpu7x:2x2x1
jax: 0.10.0
libtpu: 0.0.40
codegen_flags: <defaults>
</compile_context>

<pallas_src>
import functools

import jax
import jax.numpy as jnp
from jax.experimental import pallas as pl
from jax.experimental.pallas import tpu as pltpu


def _vmem_capacity_bytes():
    try:
        return int(pltpu.get_tpu_info().vmem_capacity_bytes)
    except Exception:
        return 64 << 20  # v7x-safe fallback


def _pick_tile_rows(n_rows, width, itemsize, row_align, vmem_cap, max_tile_bytes):
    """Rows per tile: byte-sized (MiB scale), VMEM-budgeted, sublane-aligned."""
    if max_tile_bytes is not None:
        rows = max(1, max_tile_bytes // (width * itemsize))
    else:
        # Working set per tile ~ 2x native logits tile (double-buffered input)
        # + ~5x tile-in-f32 (cast + elementwise temporaries).
        budget = (80 << 20) if vmem_cap >= (96 << 20) else (40 << 20)
        rows = budget // (width * (2 * itemsize + 5 * 4))
        rows = min(rows, (8 << 20) // (width * itemsize))  # logits tile <= 8 MiB
        rows = max(rows, 1)
    if rows >= n_rows:
        return n_rows, 1                       # single tile: block == full extent
    rows = max(row_align, (rows // row_align) * row_align)
    if rows >= n_rows:
        return n_rows, 1
    return rows, pl.cdiv(n_rows, rows)


def _focal_kernel(logits_ref, targets_ref, out_ref, *, alpha, gamma, reduction,
                  n_rows, block_rows, n_classes, seg):
    """One grid step over `block_rows` (super-)rows.

    logits_ref : (block_rows, seg * n_classes)  native dtype (f32 / bf16)
    targets_ref: (block_rows, seg)              int32
    out_ref    : 'none' -> (block_rows, seg) f32 per-row losses
                 else   -> (8, 128) f32 slab holding this tile's partial sum
    """
    pid = pl.program_id(0)
    x = logits_ref[...].astype(jnp.float32)      # f32 cast happens on the VMEM tile
    t = targets_ref[...]                         # int32
    rows, width = x.shape
    C = n_classes

    if seg == 1:
        # One original row per VMEM row (C >= 128, or batch not packable).
        m = jnp.max(x, axis=-1, keepdims=True)
        z = x - m
        p = jnp.exp(z)
        sum_e = jnp.sum(p, axis=-1, keepdims=True)                    # (rows, 1)
        cls = jax.lax.broadcasted_iota(jnp.int32, (rows, width), 1)
        onehot = cls == t                                             # (rows, C)
        zt = jnp.sum(jnp.where(onehot, z, 0.0), axis=-1, keepdims=True)
    else:
        # Lane-packed: `seg` original rows live side by side in one VMEM row,
        # so the cast / subtract / exp run at full 128-lane width.
        # Per-segment max (kept exact per original row for a stable softmax).
        maxes = [jnp.max(x[:, s * C:(s + 1) * C], axis=-1, keepdims=True)
                 for s in range(seg)]
        K = ((seg + 7) // 8) * 8
        pad = K - seg
        zpad = [jnp.zeros((rows, pad), jnp.float32)] if pad else []
        m_cols = jnp.concatenate(maxes + zpad, axis=-1)               # (rows, K)
        # Global (within the super-row) target lane index per segment.
        offs = jax.lax.broadcasted_iota(jnp.int32, (rows, seg), 1) * C
        t_cols = jnp.concatenate([(t + offs).astype(jnp.float32)] + zpad, axis=-1)

        # 0/1 expand matrix (K, width): row s covers lanes [s*C, (s+1)*C).
        lane = jax.lax.broadcasted_iota(jnp.int32, (K, width), 1)
        srow = jax.lax.broadcasted_iota(jnp.int32, (K, width), 0)
        expand = ((lane >= srow * C) & (lane < (srow + 1) * C)).astype(jnp.bfloat16)

        # Segmented broadcast-back rides the (otherwise idle) MXU.  bf16 is
        # exact for the 0/1 matrix and small-int targets; the max only needs to
        # be a per-segment constant (it cancels exactly in the log-softmax).
        m_b = jnp.dot(m_cols.astype(jnp.bfloat16), expand,
                      preferred_element_type=jnp.float32)             # (rows, width)
        t_b = jnp.dot(t_cols.astype(jnp.bfloat16), expand,
                      preferred_element_type=jnp.float32)             # (rows, width)

        z = x - m_b                                                   # full width VPU
        p = jnp.exp(z)                                                # full width EUP
        # TODO(synk): on v6e/v7x with bf16 inputs a bf16 exp (f32 accumulation)
        # would shave EUP cycles; kept f32 for exactness vs the reference.
        lane_full = jax.lax.broadcasted_iota(jnp.int32, (rows, width), 1)
        onehot = lane_full == t_b.astype(jnp.int32)
        zm = jnp.where(onehot, z, 0.0)

        # Segmented sums in f32 via lane slices (kept off the MXU for accuracy).
        sum_parts, zt_parts = [], []
        for s in range(seg):
            lo = s * C
            sum_parts.append(jnp.sum(p[:, lo:lo + C], axis=-1, keepdims=True))
            zt_parts.append(jnp.sum(zm[:, lo:lo + C], axis=-1, keepdims=True))
        sum_e = jnp.concatenate(sum_parts, axis=-1)                   # (rows, seg)
        zt = jnp.concatenate(zt_parts, axis=-1)                       # (rows, seg)

    logpt = zt - jnp.log(sum_e)          # log p_target, per original row
    ce = -logpt                          # == F.cross_entropy(..., reduction='none')
    pt = jnp.exp(logpt)
    one_minus_pt = jnp.maximum(1.0 - pt, 0.0)   # clamp: pt may round above 1

    # Trace-time gamma specialization (avoids pow's log/exp chain for 0/1/2).
    if gamma == 0.0:
        w = jnp.ones_like(one_minus_pt)
    elif gamma == 1.0:
        w = one_minus_pt
    elif gamma == 2.0:
        w = one_minus_pt * one_minus_pt
    else:
        w = jnp.power(one_minus_pt, jnp.float32(gamma))

    focal = (alpha * w) * ce                                          # per original row

    # Unconditional validity mask: handles the ragged last tile without any
    # wrapper-side padding of the logits (which would cost a full HBM copy).
    # Out-of-range targets silently give zt = 0 (same UB class as torch gather).
    row = jax.lax.broadcasted_iota(jnp.int32, focal.shape, 0) + pid * block_rows
    focal = jnp.where(row < n_rows, focal, 0.0)

    if reduction == "none":
        out_ref[...] = focal
    else:
        # Disjoint per-tile partial sums: no carried accumulator, grid axis stays
        # "parallel" (v7x can split tiles across both TensorCores).
        out_ref[...] = jnp.zeros_like(out_ref) + jnp.sum(focal)


def focal_loss(outputs, targets, *, num_classes, alpha=1.0, gamma=1.0,
               reduction="mean", max_tile_bytes=None, allow_lane_packing=True):
    """Pallas TPU FocalLoss.forward.

    outputs: (B, num_classes) float (f32 / bf16) model logits.
    targets: (B,) integer class indices in [0, num_classes).
    """
    if reduction not in ("none", "mean", "sum"):
        raise ValueError(
            f"Invalid reduction method: {reduction}. Please use 'mean' or 'sum'.")

    B, C = outputs.shape
    assert C == num_classes
    itemsize = jnp.dtype(outputs.dtype).itemsize
    vmem_cap = _vmem_capacity_bytes()

    # Lane packing: `seg` consecutive rows share one VMEM row when C < 128.
    # The reshape below is a free row-major view of the HBM buffer (no copy);
    # if B isn't divisible we fall back (padding would cost a full HBM copy).
    seg = max(1, 128 // C) if allow_lane_packing else 1
    if seg > 1 and B % seg != 0:
        seg = 1
    width = seg * C
    n_rows = B // seg

    logits2d = outputs.reshape(n_rows, width)                 # free view
    targets2d = targets.astype(jnp.int32).reshape(n_rows, seg)

    row_align = max(8, 32 // itemsize)            # sublane packing of input dtype
    tile_rows, num_tiles = _pick_tile_rows(n_rows, width, itemsize, row_align,
                                           vmem_cap, max_tile_bytes)

    # TODO(synk): for vocab-scale C (>= ~32k) add a class-dim grid with a
    # streaming (online) logsumexp instead of requiring a full-width row tile.

    kernel = functools.partial(
        _focal_kernel, alpha=float(alpha), gamma=float(gamma),
        reduction=reduction, n_rows=n_rows, block_rows=tile_rows,
        n_classes=C, seg=seg)

    in_specs = [
        pl.BlockSpec((tile_rows, width), lambda i: (i, 0)),   # logits (native dtype)
        pl.BlockSpec((tile_rows, seg), lambda i: (i, 0)),     # targets
    ]
    if reduction == "none":
        out_shape = jax.ShapeDtypeStruct((n_rows, seg), jnp.float32)
        out_specs = pl.BlockSpec((tile_rows, seg), lambda i: (i, 0))
        out_bytes = n_rows * seg * 4
    else:
        # One (8, 128) f32 slab of (identical) partial-sum values per tile;
        # the few partials are combined in the wrapper.
        out_shape = jax.ShapeDtypeStruct((8 * num_tiles, 128), jnp.float32)
        out_specs = pl.BlockSpec((8, 128), lambda i: (i, 0))
        out_bytes = num_tiles * 8 * 128 * 4

    tile_native = tile_rows * width * itemsize
    tile_f32 = tile_rows * width * 4
    vmem_limit = (2 * tile_native + 5 * tile_f32
                  + 4 * tile_rows * max(seg, 8) * 8 + (8 << 20))
    vmem_limit = int(min(max(vmem_limit, 32 << 20), vmem_cap - (4 << 20)))

    cost = pl.CostEstimate(
        flops=10 * B * C,
        transcendentals=B * C + 3 * B,
        bytes_accessed=B * C * itemsize + B * 4 + out_bytes)

    result = pl.pallas_call(
        kernel,
        out_shape=out_shape,
        grid=(num_tiles,),
        in_specs=in_specs,
        out_specs=out_specs,
        compiler_params=pltpu.CompilerParams(
            dimension_semantics=("parallel",),
            vmem_limit_bytes=vmem_limit),
        cost_estimate=cost,
    )(logits2d, targets2d)

    if reduction == "none":
        return result.reshape(B)
    total = jnp.sum(result[0::8, 0])
    if reduction == "mean":
        return total / jnp.float32(B)
    return total


def _focal_loss_ref(outputs, targets, *, alpha, gamma, reduction):
    """Pure-JAX reference mirroring the PyTorch forward."""
    logp = jax.nn.log_softmax(outputs.astype(jnp.float32), axis=-1)
    ce = -jnp.take_along_axis(logp, targets[:, None].astype(jnp.int32),
                              axis=-1)[:, 0]
    pt = jnp.exp(-ce)
    fl = alpha * (1.0 - pt) ** gamma * ce
    if reduction == "none":
        return fl
    if reduction == "mean":
        return fl.mean()
    return fl.sum()


if __name__ == "__main__":
    NUM_CLASSES = 32
    ALPHA = 1.0

    key = jax.random.PRNGKey(0)
    k1, k2, k3, k4, k5, k6 = jax.random.split(key, 6)

    # --- lane-packed path (B % 4 == 0), f32, gamma=1.0 (module defaults) ------
    B = 8
    outputs = jax.random.normal(k1, (B, NUM_CLASSES), dtype=jnp.float32)
    targets = jax.random.randint(k2, (B,), 0, NUM_CLASSES, dtype=jnp.int32)

    loss = focal_loss(outputs, targets, num_classes=NUM_CLASSES, alpha=ALPHA,
                      gamma=1.0, reduction="mean")
    loss = jax.block_until_ready(loss)
    ref = _focal_loss_ref(outputs, targets, alpha=ALPHA, gamma=1.0,
                          reduction="mean")
    assert jnp.allclose(loss, ref, rtol=1e-5, atol=1e-6), (loss, ref)

    per_row = focal_loss(outputs, targets, num_classes=NUM_CLASSES, alpha=ALPHA,
                         gamma=1.0, reduction="none")
    per_row = jax.block_until_ready(per_row)
    ref_none = _focal_loss_ref(outputs, targets, alpha=ALPHA, gamma=1.0,
                               reduction="none")
    assert per_row.shape == (B,)
    assert jnp.allclose(per_row, ref_none, rtol=1e-5, atol=1e-5)

    # --- unpacked fallback (B % 4 != 0), bf16 logits, gamma=2, 'sum' ----------
    B2 = 10
    outputs2 = jax.random.normal(k3, (B2, NUM_CLASSES), dtype=jnp.bfloat16)
    targets2 = jax.random.randint(k4, (B2,), 0, NUM_CLASSES, dtype=jnp.int32)
    loss2 = focal_loss(outputs2, targets2, num_classes=NUM_CLASSES, alpha=ALPHA,
                       gamma=2.0, reduction="sum")
    loss2 = jax.block_until_ready(loss2)
    ref2 = _focal_loss_ref(outputs2, targets2, alpha=ALPHA, gamma=2.0,
                           reduction="sum")
    assert jnp.allclose(loss2, ref2, rtol=1e-4, atol=1e-4), (loss2, ref2)

    # --- packed, multi-tile grid with ragged last tile (forced small tiles),
    #     non-integer gamma (pow branch + clamp) --------------------------------
    B3 = 80
    outputs3 = jax.random.normal(k5, (B3, NUM_CLASSES), dtype=jnp.float32)
    targets3 = jax.random.randint(k6, (B3,), 0, NUM_CLASSES, dtype=jnp.int32)
    loss3m = focal_loss(outputs3, targets3, num_classes=NUM_CLASSES, alpha=0.25,
                        gamma=1.5, reduction="mean", max_tile_bytes=4096)
    loss3n = focal_loss(outputs3, targets3, num_classes=NUM_CLASSES, alpha=0.25,
                        gamma=1.5, reduction="none", max_tile_bytes=4096)
    jax.block_until_ready((loss3m, loss3n))
    ref3m = _focal_loss_ref(outputs3, targets3, alpha=0.25, gamma=1.5,
                            reduction="mean")
    ref3n = _focal_loss_ref(outputs3, targets3, alpha=0.25, gamma=1.5,
                            reduction="none")
    assert jnp.allclose(loss3m, ref3m, rtol=1e-5, atol=1e-6), (loss3m, ref3m)
    assert jnp.allclose(loss3n, ref3n, rtol=1e-5, atol=1e-5)

    print("KERNEL_OK")
</pallas_src>

<mosaic_0001>
module attributes {stable_mosaic.version = 11 : i64} {
  func.func @_focal_kernel(%arg0: i32, %arg1: memref<2x128xf32, #tpu.memory_space<vmem>>, %arg2: memref<2x4xi32, #tpu.memory_space<vmem>>, %arg3: memref<8x128xf32, #tpu.memory_space<vmem>>) attributes {dimension_semantics = [#tpu.dimension_semantics<parallel>], iteration_bounds = array<i64: 1>, scalar_prefetch = 0 : i64, scratch_operands = 0 : i64, tpu.core_type = #tpu.core_type<tc>, window_params = [{transform_indices = @transform_0, window_bounds = array<i64: 2, 128>}, {transform_indices = @transform_1, window_bounds = array<i64: 2, 4>}, {transform_indices = @transform_2, window_bounds = array<i64: 8, 128>}]} {
    %c0 = arith.constant 0 : index
    %c0_0 = arith.constant 0 : index
    %0 = vector.load %arg1[%c0, %c0_0] : memref<2x128xf32, #tpu.memory_space<vmem>>, vector<2x128xf32>
    %c0_1 = arith.constant 0 : index
    %c0_2 = arith.constant 0 : index
    %1 = vector.load %arg2[%c0_1, %c0_2] : memref<2x4xi32, #tpu.memory_space<vmem>>, vector<2x4xi32>
    %2 = vector.extract_strided_slice %0 {offsets = [0, 0], sizes = [2, 32], strides = [1, 1]} : vector<2x128xf32> to vector<2x32xf32>
    %cst = arith.constant dense<0xFF800000> : vector<2xf32>
    %3 = vector.multi_reduction <maximumf>, %2, %cst [1] : vector<2x32xf32> to vector<2xf32>
    %4 = vector.shape_cast %3 : vector<2xf32> to vector<2x1xf32>
    %5 = vector.extract_strided_slice %0 {offsets = [0, 32], sizes = [2, 32], strides = [1, 1]} : vector<2x128xf32> to vector<2x32xf32>
    %cst_3 = arith.constant dense<0xFF800000> : vector<2xf32>
    %6 = vector.multi_reduction <maximumf>, %5, %cst_3 [1] : vector<2x32xf32> to vector<2xf32>
    %7 = vector.shape_cast %6 : vector<2xf32> to vector<2x1xf32>
    %8 = vector.extract_strided_slice %0 {offsets = [0, 64], sizes = [2, 32], strides = [1, 1]} : vector<2x128xf32> to vector<2x32xf32>
    %cst_4 = arith.constant dense<0xFF800000> : vector<2xf32>
    %9 = vector.multi_reduction <maximumf>, %8, %cst_4 [1] : vector<2x32xf32> to vector<2xf32>
    %10 = vector.shape_cast %9 : vector<2xf32> to vector<2x1xf32>
    %11 = vector.extract_strided_slice %0 {offsets = [0, 96], sizes = [2, 32], strides = [1, 1]} : vector<2x128xf32> to vector<2x32xf32>
    %cst_5 = arith.constant dense<0xFF800000> : vector<2xf32>
    %12 = vector.multi_reduction <maximumf>, %11, %cst_5 [1] : vector<2x32xf32> to vector<2xf32>
    %13 = vector.shape_cast %12 : vector<2xf32> to vector<2x1xf32>
    %cst_6 = arith.constant 0.000000e+00 : f32
    %14 = vector.broadcast %cst_6 : f32 to vector<2x4xf32>
    %15 = tpu.concatenate %4, %7, %10, %13, %14 in 1 : vector<2x1xf32>, vector<2x1xf32>, vector<2x1xf32>, vector<2x1xf32>, vector<2x4xf32> -> vector<2x8xf32>
    %16 = tpu.iota {dimensions = array<i32: 1>} : vector<2x4xi32>
    %c32_i32 = arith.constant 32 : i32
    %17 = vector.broadcast %c32_i32 : i32 to vector<2x4xi32>
    %18 = arith.muli %16, %17 : vector<2x4xi32>
    %19 = arith.addi %1, %18 : vector<2x4xi32>
    %20 = arith.sitofp %19 : vector<2x4xi32> to vector<2x4xf32>
    %21 = tpu.concatenate %20, %14 in 1 : vector<2x4xf32>, vector<2x4xf32> -> vector<2x8xf32>
    %22 = tpu.iota {dimensions = array<i32: 1>} : vector<8x128xi32>
    %23 = tpu.iota {dimensions = array<i32: 0>} : vector<8x128xi32>
    %c32_i32_7 = arith.constant 32 : i32
    %24 = vector.broadcast %c32_i32_7 : i32 to vector<8x128xi32>
    %25 = arith.muli %23, %24 : vector<8x128xi32>
    %26 = arith.cmpi sge, %22, %25 : vector<8x128xi32>
    %c1_i32 = arith.constant 1 : i32
    %27 = vector.broadcast %c1_i32 : i32 to vector<8x128xi32>
    %28 = arith.addi %23, %27 : vector<8x128xi32>
    %c32_i32_8 = arith.constant 32 : i32
    %29 = vector.broadcast %c32_i32_8 : i32 to vector<8x128xi32>
    %30 = arith.muli %28, %29 : vector<8x128xi32>
    %31 = arith.cmpi slt, %22, %30 : vector<8x128xi32>
    %32 = arith.andi %26, %31 : vector<8x128xi1>
    %33 = arith.extui %32 : vector<8x128xi1> to vector<8x128xi32>
    %34 = arith.sitofp %33 : vector<8x128xi32> to vector<8x128xf32>
    %35 = arith.truncf %34 : vector<8x128xf32> to vector<8x128xbf16>
    %36 = arith.truncf %15 : vector<2x8xf32> to vector<2x8xbf16>
    %cst_9 = arith.constant dense<0.000000e+00> : vector<2x128xf32>
    %37 = tpu.matmul %36, %35, %cst_9 {dimension_numbers = #tpu.dot_dimension_numbers<[1], [0], [0], [1], [0, 0, 1, 1], [], []>} : vector<2x8xbf16>, vector<8x128xbf16>, vector<2x128xf32> -> vector<2x128xf32>
    %38 = arith.truncf %21 : vector<2x8xf32> to vector<2x8xbf16>
    %cst_10 = arith.constant dense<0.000000e+00> : vector<2x128xf32>
    %39 = tpu.matmul %38, %35, %cst_10 {dimension_numbers = #tpu.dot_dimension_numbers<[1], [0], [0], [1], [0, 0, 1, 1], [], []>} : vector<2x8xbf16>, vector<8x128xbf16>, vector<2x128xf32> -> vector<2x128xf32>
    %40 = arith.subf %0, %37 : vector<2x128xf32>
    %41 = math.exp %40 : vector<2x128xf32>
    %42 = tpu.iota {dimensions = array<i32: 1>} : vector<2x128xi32>
    %43 = arith.fptosi %39 : vector<2x128xf32> to vector<2x128xi32>
    %44 = arith.cmpi eq, %42, %43 : vector<2x128xi32>
    %cst_11 = arith.constant 0.000000e+00 : f32
    %45 = vector.broadcast %cst_11 : f32 to vector<2x128xf32>
    %46 = arith.select %44, %40, %45 : vector<2x128xi1>, vector<2x128xf32>
    %47 = vector.extract_strided_slice %41 {offsets = [0, 0], sizes = [2, 32], strides = [1, 1]} : vector<2x128xf32> to vector<2x32xf32>
    %cst_12 = arith.constant dense<0.000000e+00> : vector<2xf32>
    %48 = vector.multi_reduction <add>, %47, %cst_12 [1] : vector<2x32xf32> to vector<2xf32>
    %49 = vector.shape_cast %48 : vector<2xf32> to vector<2x1xf32>
    %50 = vector.extract_strided_slice %46 {offsets = [0, 0], sizes = [2, 32], strides = [1, 1]} : vector<2x128xf32> to vector<2x32xf32>
    %cst_13 = arith.constant dense<0.000000e+00> : vector<2xf32>
    %51 = vector.multi_reduction <add>, %50, %cst_13 [1] : vector<2x32xf32> to vector<2xf32>
    %52 = vector.shape_cast %51 : vector<2xf32> to vector<2x1xf32>
    %53 = vector.extract_strided_slice %41 {offsets = [0, 32], sizes = [2, 32], strides = [1, 1]} : vector<2x128xf32> to vector<2x32xf32>
    %cst_14 = arith.constant dense<0.000000e+00> : vector<2xf32>
    %54 = vector.multi_reduction <add>, %53, %cst_14 [1] : vector<2x32xf32> to vector<2xf32>
    %55 = vector.shape_cast %54 : vector<2xf32> to vector<2x1xf32>
    %56 = vector.extract_strided_slice %46 {offsets = [0, 32], sizes = [2, 32], strides = [1, 1]} : vector<2x128xf32> to vector<2x32xf32>
    %cst_15 = arith.constant dense<0.000000e+00> : vector<2xf32>
    %57 = vector.multi_reduction <add>, %56, %cst_15 [1] : vector<2x32xf32> to vector<2xf32>
    %58 = vector.shape_cast %57 : vector<2xf32> to vector<2x1xf32>
    %59 = vector.extract_strided_slice %41 {offsets = [0, 64], sizes = [2, 32], strides = [1, 1]} : vector<2x128xf32> to vector<2x32xf32>
    %cst_16 = arith.constant dense<0.000000e+00> : vector<2xf32>
    %60 = vector.multi_reduction <add>, %59, %cst_16 [1] : vector<2x32xf32> to vector<2xf32>
    %61 = vector.shape_cast %60 : vector<2xf32> to vector<2x1xf32>
    %62 = vector.extract_strided_slice %46 {offsets = [0, 64], sizes = [2, 32], strides = [1, 1]} : vector<2x128xf32> to vector<2x32xf32>
    %cst_17 = arith.constant dense<0.000000e+00> : vector<2xf32>
    %63 = vector.multi_reduction <add>, %62, %cst_17 [1] : vector<2x32xf32> to vector<2xf32>
    %64 = vector.shape_cast %63 : vector<2xf32> to vector<2x1xf32>
    %65 = vector.extract_strided_slice %41 {offsets = [0, 96], sizes = [2, 32], strides = [1, 1]} : vector<2x128xf32> to vector<2x32xf32>
    %cst_18 = arith.constant dense<0.000000e+00> : vector<2xf32>
    %66 = vector.multi_reduction <add>, %65, %cst_18 [1] : vector<2x32xf32> to vector<2xf32>
    %67 = vector.shape_cast %66 : vector<2xf32> to vector<2x1xf32>
    %68 = vector.extract_strided_slice %46 {offsets = [0, 96], sizes = [2, 32], strides = [1, 1]} : vector<2x128xf32> to vector<2x32xf32>
    %cst_19 = arith.constant dense<0.000000e+00> : vector<2xf32>
    %69 = vector.multi_reduction <add>, %68, %cst_19 [1] : vector<2x32xf32> to vector<2xf32>
    %70 = vector.shape_cast %69 : vector<2xf32> to vector<2x1xf32>
    %71 = tpu.concatenate %49, %55, %61, %67 in 1 : vector<2x1xf32>, vector<2x1xf32>, vector<2x1xf32>, vector<2x1xf32> -> vector<2x4xf32>
    %72 = tpu.concatenate %52, %58, %64, %70 in 1 : vector<2x1xf32>, vector<2x1xf32>, vector<2x1xf32>, vector<2x1xf32> -> vector<2x4xf32>
    %73 = math.log %71 : vector<2x4xf32>
    %74 = arith.subf %72, %73 : vector<2x4xf32>
    %cst_20 = arith.constant 0.000000e+00 : f32
    %75 = vector.broadcast %cst_20 : f32 to vector<2x4xf32>
    %76 = arith.subf %75, %74 : vector<2x4xf32>
    %77 = math.exp %74 : vector<2x4xf32>
    %cst_21 = arith.constant 1.000000e+00 : f32
    %78 = vector.broadcast %cst_21 : f32 to vector<2x4xf32>
    %79 = arith.subf %78, %77 : vector<2x4xf32>
    %cst_22 = arith.constant 0.000000e+00 : f32
    %80 = vector.broadcast %cst_22 : f32 to vector<2x4xf32>
    %81 = arith.maximumf %79, %80 : vector<2x4xf32>
    %cst_23 = arith.constant 1.000000e+00 : f32
    %82 = vector.broadcast %cst_23 : f32 to vector<2x4xf32>
    %83 = arith.mulf %82, %81 : vector<2x4xf32>
    %84 = arith.mulf %83, %76 : vector<2x4xf32>
    %85 = tpu.iota {dimensions = array<i32: 0>} : vector<2x4xi32>
    %c2_i32 = arith.constant 2 : i32
    %86 = arith.muli %arg0, %c2_i32 : i32
    %87 = vector.broadcast %86 : i32 to vector<2x4xi32>
    %88 = arith.addi %85, %87 : vector<2x4xi32>
    %c2_i32_24 = arith.constant 2 : i32
    %89 = vector.broadcast %c2_i32_24 : i32 to vector<2x4xi32>
    %90 = arith.cmpi slt, %88, %89 : vector<2x4xi32>
    %cst_25 = arith.constant 0.000000e+00 : f32
    %91 = vector.broadcast %cst_25 : f32 to vector<2x4xf32>
    %92 = arith.select %90, %84, %91 : vector<2x4xi1>, vector<2x4xf32>
    %cst_26 = arith.constant 0.000000e+00 : f32
    %93 = vector.broadcast %cst_26 : f32 to vector<8x128xf32>
    %94 = vector.shape_cast %92 : vector<2x4xf32> to vector<1x2x4xf32>
    %cst_27 = arith.constant dense<0.000000e+00> : vector<1xf32>
    %95 = vector.multi_reduction <add>, %94, %cst_27 [1, 2] : vector<1x2x4xf32> to vector<1xf32>
    %96 = vector.shape_cast %95 : vector<1xf32> to vector<1x1x1xf32>
    %97 = vector.extract %96[0, 0, 0] : f32 from vector<1x1x1xf32>
    %98 = vector.broadcast %97 : f32 to vector<8x128xf32>
    %99 = arith.addf %93, %98 : vector<8x128xf32>
    %c0_28 = arith.constant 0 : index
    %c0_29 = arith.constant 0 : index
    %100 = vector.load %arg3[%c0_28, %c0_29] : memref<8x128xf32, #tpu.memory_space<vmem>>, vector<8x128xf32>
    tpu.vector_store %arg3[%c0_28, %c0_29], %99 {strides = array<i32>} : memref<8x128xf32, #tpu.memory_space<vmem>>, vector<8x128xf32>,
    return
  }
  func.func @transform_0(%arg0: i32) -> (i32, i32) {
    %c0_i32 = arith.constant 0 : i32
    %c0_i32_0 = arith.constant 0 : i32
    return %arg0, %c0_i32 : i32, i32
  }
  func.func @transform_1(%arg0: i32) -> (i32, i32) {
    %c0_i32 = arith.constant 0 : i32
    %c0_i32_0 = arith.constant 0 : i32
    return %arg0, %c0_i32 : i32, i32
  }
  func.func @transform_2(%arg0: i32) -> (i32, i32) {
    %c0_i32 = arith.constant 0 : i32
    %c0_i32_0 = arith.constant 0 : i32
    return %arg0, %c0_i32 : i32, i32
  }
}

</mosaic_0001>

<bundles_post_ra>
// kernel: tpu_custom_call.1
= control target key start
LH: loop header
LB: loop body
LE: loop exit
PB: predicated region body
PF: predicated region fallthrough
CT: control target
= control target key end

     0   :  { %7 = vsyncpa [#allocation3], 0  ;;  %s418_s0 = inlined_call_operand.hbm [shape: f32[2,128], index: 0, kind: input, shape index: {}]   ;;  %s419_s1 = inlined_call_operand.vmem [shape: s32[2,4], index: 1, kind: input, shape index: {}]   ;;  %s420_s2 = inlined_call_operand.hbm [shape: f32[8,128], index: 2, kind: output, shape index: {}]  }
   0x1   :  { %8 = vsyncpa [#allocation4], 0  ;;  %s344_s9 = smov [#allocation2]   ;;  %s296_s13 = scalar_lea.hbm %s418_s0, 32 }
   0x2   :  { %s15_s10 = sshll.u32 %s344_s9, 4  ;;  %p297_p0 = scmp.ne.s32.totalorder %s418_s0, %s296_s13  ;;  %s16_s10 = int_to_ptr.vmem [resolvable:$true] %s15_s10 }
   0x3   :  { %p300_p1 = scmp.lt.u32.totalorder %s296_s13, %s418_s0 }
   0x5   :  { %p302_p2 = pnand %p300_p1, %p297_p0 }
   0x7   :  { %305 = shalt.err (!%p302_p2)
}
   0x8   :  { %s306_s18 = scalar_lea.vmem %s16_s10, 32  ;;  %p311_p4 = scmp.lt.s32.totalorder %s16_s10, %s16_s10 }
   0x9   :  { %p307_p3 = scmp.ne.s32.totalorder %s16_s10, %s306_s18  ;;  %p312_p5 = scmp.lt.s32.totalorder %s306_s18, %s306_s18 }
   0xb   :  { %p313_p6 = por %p312_p5, %p311_p4 }
   0xd   :  { %p314_p7 = pnand %p313_p6, %p307_p3 }
   0xf   :  { %317 = shalt.err (!%p314_p7)
}
  0x10   :  { %18 = dma.hbm_to_vmem [thread:$0]  %s418_s0, 32, %s16_s10, [#allocation3]  }
  0x11   :  { %340 = dma.done.wait [#allocation3], 32  }
  0x12   :  { %341 = vsyncadd [#allocation3], 4294967264  ;;  %vm27_vm0 = vcmask 254976   ;;  %vm35_vm1 = vcmask 779776   ;;  %v25_v0 = vld [vmem:[#allocation2] sm:$0x3]  ;;  %v51_v5 = vlaneseq }
  0x13   :  { %vm31_vm2 = vcmask 517376   ;;  %vm39_vm3 = vcmask 1042176   ;;  %v28_v1 = vsel %vm27_vm0, %v25_v0, -inf  ;;  %v36_v2 = vsel %vm35_vm1, %v25_v0, -inf  ;;  %v26_v12 = vld [vmem:[%s419_s1] sm:$0x3] }
  0x14   :  { %29 = vmax.xlane.f32.xlu0 %v28_v1  ;;  %37 = vmax.xlane.f32.xlu1 %v36_v2  ;;  %v32_v3 = vsel %vm31_vm2, %v25_v0, -inf  ;;  %v40_v4 = vsel %vm39_vm3, %v25_v0, -inf  ;;  %v379_v6 = vshrl.u32 %v51_v5, 7  ;;  %v52_v8 = vand.u32 127, %v51_v5  ;;  %s347_s1 = smov 64   ;;  %s348_s22 = smov 96  }
  0x15   :  { %v345_v13 = vmov 0.0   ;;  %vm73_vm7 = vcmask 1043456   ;;  %vm49_vm8 = vcmask 31744   ;;  %vm346_vm9 = vmmov 0   ;;  %s349_s23 = smov 32   ;;  %s350_s24 = smov [#allocation5]  }
  0x16   :  { %v61_v7 = vadd.s32 1, %v379_v6  ;;  %v59_v9 = vmul.u32 32, %v379_v6  ;;  %v53_v11 = vmul.u32 32, %v52_v8  ;;  %273 = vmatprep.subr.bf16.mxu1 %v345_v13  ;;  %267 = vmatprep.subr.bf16.mxu0 %v345_v13  ;;  %vm69_vm10 = vcmask 64512   ;;  %s251_s25 = sshll.u32 %s350_s24, 4  ;;  %s252_s25 = int_to_ptr.vmem [resolvable:$true] %s251_s25 }
  0x17   :  { %275 = vmatprep.mubr.msk.bf16.mxu1 %vm346_vm9, %v345_v13  ;;  %269 = vmatprep.mubr.msk.bf16.mxu0 %vm346_vm9, %v345_v13  ;;  %vm43_vm11 = vcmask 7168   ;;  %vm45_vm12 = vcmask 15360   ;;  %vm47_vm13 = vcmask 23552   ;;  %vm229_vm15 = vcmp.lt.s32.totalorder %v379_v6, 2  ;;  %s318_s27 = scalar_lea.vmem %s252_s25, 128  ;;  %p323_p9 = scmp.lt.s32.totalorder %s252_s25, %s252_s25 }
  0x18   :  { %33 = vmax.xlane.f32.xlu0 %v32_v3  ;;  %41 = vmax.xlane.f32.xlu1 %v40_v4  ;;  %v62_v10 = vmul.u32 32, %v61_v7  ;;  %vm60_vm4 = vcmp.ge.s32.totalorder %v52_v8, %v59_v9  ;;  %v54_v15 = vadd.s32 %v53_v11, %v26_v12  ;;  %p319_p8 = scmp.ne.s32.totalorder %s252_s25, %s318_s27  ;;  %p324_p10 = scmp.lt.s32.totalorder %s318_s27, %s318_s27 }
  0x1a   :  { %vm63_vm5 = vcmp.lt.s32.totalorder %v52_v8, %v62_v10  ;;  %v55_v17 = vcvt.s32.f32 %v54_v15  ;;  %p325_p11 = por %p324_p10, %p323_p9 }
  0x1b   :  { %vm64_vm6 = vmand %vm60_vm4, %vm63_vm5 }
  0x1c   :  { %v260_v14 = vsel %vm64_vm6, 1.0, %v345_v13  ;;  %v56_v19 = vsel %vm49_vm8, %v55_v17, 0.0  ;;  %p326_p12 = pnand %p325_p11, %p319_p8 }
  0x1d   :  { %v67_v16 = vpack.c.bf16 %v260_v14, %v260_v14  ;;  %v117_v20 = vpack.c.bf16 %v56_v19, %v56_v19 }
  0x1f   :  { %v75_v18 = vsel %vm73_vm7, %v67_v16, 0 }
  0x20   :  { %274 = vmatpush3.bf16.msra.mxu1 %v75_v18  ;;  %268 = vmatpush3.bf16.msra.mxu0 %v75_v18 }
  0x23   :  { %276 = vmatmul.mubr.msk.bf16.vlgmr.msra.gmra.mrb[0].mxu1 %vm69_vm10, %v117_v20 }
  0xa1   :  { %v30_v21 = vpop.xlane.xlu0 %29  ;;  %v38_v22 = vpop.xlane.xlu1 %37 }
  0xa5   :  { %v34_v23 = vpop.xlane.xlu0 %33  ;;  %v42_v24 = vpop.xlane.xlu1 %41 }
  0xa6   :  { %v44_v25 = vsel %vm43_vm11, %v30_v21, %v34_v23 }
  0xa7   :  { %v46_v26 = vsel %vm45_vm12, %v44_v25, %v38_v22 }
  0xa8   :  { %v48_v27 = vsel %vm47_vm13, %v46_v26, %v42_v24 }
  0xa9   :  { %v50_v28 = vsel %vm49_vm8, %v48_v27, 0.0 }
  0xaa   :  { %v68_v29 = vpack.c.bf16 %v50_v28, %v50_v28 }
  0xac   :  { %270 = vmatmul.mubr.msk.bf16.vlgmr.msra.gmra.mrb[0].mxu0 %vm69_vm10, %v68_v29 }
  0xf6   :  { %v155_v30 = vpop.f32.mrb[0].mxu1 }
  0xf7   :  { %v277_v31 = vpop.f32.mrb[1].mxu1  ;;  %v279_v34 = vtrunc.f32 %v155_v30 }
  0xf8   :  { %v158_v32 = vpop.f32.mrb[2].mxu1 }
  0xf9   :  { %v278_v33 = vpop.f32.mrb[3].mxu1  ;;  %v280_v35 = vcvt.f32.s32 %v279_v34 }
  0xfb   :  { %vm165_vm14 = vcmp.eq.s32.totalorder %v52_v8, %v280_v35 }
 0x17f   :  { %v111_v36 = vpop.f32.mrb[0].mxu0 }
 0x180   :  { %v161_v37 = vsub.f32 %v25_v0, %v111_v36  ;;  %v271_v38 = vpop.f32.mrb[1].mxu0 }
 0x181   :  { %v114_v39 = vpop.f32.mrb[2].mxu0 }
 0x182   :  { %v162_v40 = vmul.f32 1.442695, %v161_v37  ;;  %v166_v41 = vsel %vm165_vm14, %v161_v37, 0.0  ;;  %v272_v42 = vpop.f32.mrb[3].mxu0 }
 0x183   :  { %v170_v53 = vsel %vm27_vm0, %v166_v41, 0.0 }
 0x184   :  { %290 = vpow2.f32 %v162_v40 }
 0x18e   :  { %v291_v43 = vpop.eup %290 }
 0x18f   :  { %187 = vrot.lane.b32.xlu1 %v291_v43, %s347_s1  ;;  %174 = vrot.lane.b32.xlu0 %v291_v43, %s348_s22  ;;  %v167_v44 = vsel %vm27_vm0, %v291_v43, 0.0 }
 0x193   :  { %199 = vrot.lane.b32.xlu1 %v291_v43, %s349_s23  ;;  %193 = vrot.lane.b32.xlu0 %v166_v41, %s347_s1 }
 0x197   :  { %181 = vrot.lane.b32.xlu1 %v166_v41, %s348_s22 }
 0x19b   :  { %205 = vrot.lane.b32.xlu1 %v166_v41, %s349_s23 }
 0x1b2   :  { %168 = vadd.xlane.f32.xlu0 %v167_v44 }
 0x201   :  { %v188_v45 = vpop.permute.xlu1 %187  ;;  %v175_v46 = vpop.permute.xlu0 %174 }
 0x202   :  { %v177_v47 = vsel %vm27_vm0, %v175_v46, 0.0  ;;  %v190_v48 = vsel %vm27_vm0, %v188_v45, 0.0 }
 0x203   :  { %178 = vadd.xlane.f32.xlu1 %v177_v47  ;;  %191 = vadd.xlane.f32.xlu0 %v190_v48 }
 0x205   :  { %v200_v49 = vpop.permute.xlu1 %199  ;;  %v194_v54 = vpop.permute.xlu0 %193 }
 0x206   :  { %v202_v50 = vsel %vm27_vm0, %v200_v49, 0.0  ;;  %v196_v57 = vsel %vm27_vm0, %v194_v54, 0.0 }
 0x207   :  { %203 = vadd.xlane.f32.xlu0 %v202_v50 }
 0x209   :  { %v182_v51 = vpop.permute.xlu1 %181 }
 0x20a   :  { %v184_v52 = vsel %vm27_vm0, %v182_v51, 0.0 }
 0x20b   :  { %185 = vadd.xlane.f32.xlu1 %v184_v52  ;;  %171 = vadd.xlane.f32.xlu0 %v170_v53 }
 0x20d   :  { %v206_v55 = vpop.permute.xlu1 %205 }
 0x20e   :  { %v208_v56 = vsel %vm27_vm0, %v206_v55, 0.0  ;;  %vm231_vm0 = vcmask 25600  }
 0x20f   :  { %209 = vadd.xlane.f32.xlu1 %v208_v56  ;;  %197 = vadd.xlane.f32.xlu0 %v196_v57 }
 0x23f   :  { %v169_v58 = vpop.xlane.xlu0 %168 }
 0x290   :  { %v179_v59 = vpop.xlane.xlu1 %178  ;;  %v192_v60 = vpop.xlane.xlu0 %191 }
 0x291   :  { %v211_v61 = vsel %vm43_vm11, %v169_v58, %v179_v59 }
 0x292   :  { %v212_v62 = vsel %vm45_vm12, %v211_v61, %v192_v60 }
 0x294   :  { %v204_v63 = vpop.xlane.xlu0 %203 }
 0x295   :  { %v213_v0 = vsel %vm47_vm13, %v212_v62, %v204_v63 }
 0x296   :  { %292 = vlog2.f32 %v213_v0 }
 0x298   :  { %v172_v1 = vpop.xlane.xlu0 %171  ;;  %v186_v2 = vpop.xlane.xlu1 %185 }
 0x299   :  { %v214_v4 = vsel %vm43_vm11, %v172_v1, %v186_v2 }
 0x29c   :  { %v198_v3 = vpop.xlane.xlu0 %197  ;;  %v210_v5 = vpop.xlane.xlu1 %209 }
 0x29d   :  { %v215_v7 = vsel %vm45_vm12, %v214_v4, %v198_v3 }
 0x29e   :  { %v216_v10 = vsel %vm47_vm13, %v215_v7, %v210_v5 }
 0x2a0   :  { %v293_v8 = vpop.eup %292 }
 0x2a1   :  { %v218_v9 = vmul.f32 0.6931472, %v293_v8 }
 0x2a3   :  { %v219_v11 = vsub.f32 %v216_v10, %v218_v9 }
 0x2a5   :  { %v221_v12 = vmul.f32 1.442695, %v219_v11  ;;  %v220_v15 = vsub.f32 0.0, %v219_v11 }
 0x2a7   :  { %294 = vpow2.f32 %v221_v12 }
 0x2b1   :  { %v295_v13 = vpop.eup %294 }
 0x2b2   :  { %v223_v14 = vsub.f32 1.0, %v295_v13 }
 0x2b4   :  { %v224_v16 = vmax.f32 %v223_v14, 0.0 }
 0x2b6   :  { %v225_v17 = vmul.f32 %v224_v16, %v220_v15 }
 0x2b8   :  { %v230_v18 = vsel %vm229_vm15, %v225_v17, 0.0 }
 0x2b9   :  { %v232_v19 = vsel %vm231_vm0, %v230_v18, 0.0 }
 0x2ba   :  { %233 = vadd.xlane.f32.xlu0 %v232_v19 }
 0x347   :  { %v234_v20 = vpop.xlane.xlu0 %233 }
 0x348   :  { %v235_v21 = vrot.slane %v234_v20, 4 }
 0x34a   :  { %v236_v22 = vadd.f32 %v235_v21, %v234_v20 }
 0x34c   :  { %v237_v23 = vrot.slane %v236_v22, 2 }
 0x34e   :  { %v238_v24 = vadd.f32 %v237_v23, %v236_v22 }
 0x350   :  { %v239_v25 = vrot.slane %v238_v24, 1 }
 0x352   :  { %v240_v26 = vadd.f32 %v239_v25, %v238_v24 }
 0x354   :  { %281 = vpush %v240_v26 }
 0x385   :  { %s282_s26 = spop %281 }
 0x386   :  { %v242_v27 = vstv %s282_s26 }
 0x387   :  { %244 = vst [vmem:[#allocation5] sm:$0xff] %v242_v27 }
 0x388   :  { %329 = shalt.err (!%p326_p12)
}
 0x389   :  { %s330_s30 = scalar_lea.hbm %s420_s2, 128 }
 0x38a   :  { %p331_p13 = scmp.ne.s32.totalorder %s420_s2, %s330_s30  ;;  %p334_p0 = scmp.lt.u32.totalorder %s330_s30, %s420_s2 }
 0x38c   :  { %p336_p1 = pnand %p334_p0, %p331_p13 }
 0x38e   :  { %339 = shalt.err (!%p336_p1)
}
 0x38f   :  { %254 = dma.vmem_to_hbm [thread:$0]  %s252_s25, 128, %s420_s2, [#allocation4]  }
 0x390   :  { %342 = dma.done.wait [#allocation4], 128  }
 0x391   :  { %343 = vsyncadd [#allocation4], 4294967168 }
 0x392   :  { %258 = vsyncpa [#allocation3], 1 }
 0x393   :  { %259 = vsyncpa [#allocation4], 1 }

</bundles_post_ra>
